<compile_context>
chip_gen: v5e
topology: v5e:2x2
jax: 0.10.0
libtpu: 0.0.40
codegen_flags: <defaults>
</compile_context>

<pallas_src>
from functools import partial

import jax
import jax.numpy as jnp
from jax.experimental import pallas as pl
from jax.experimental.pallas import tpu as pltpu


def _round_up(x: int, m: int) -> int:
    return ((x + m - 1) // m) * m


def _utility_softmax_kernel(ctx_ref, theta_ref, out_ref):
    # ctx_ref:   (block_b, A*d) f32  lane-dense flattened contexts
    # theta_ref: (A*d, A)       f32  block-diagonal theta (constant index_map
    #                                -> stays resident across grid steps)
    # out_ref:   (block_b, A)   f32  softmax probabilities
    #
    # u[b, a] = sum_k context[b, a, k] * theta[k]   via one MXU matmul
    u = jnp.dot(ctx_ref[...], theta_ref[...],
                preferred_element_type=jnp.float32)      # (block_b, A)
    # numerically stable softmax over the action axis
    m = jnp.max(u, axis=-1, keepdims=True)               # (block_b, 1)
    e = jnp.exp(u - m)                                    # EUP exp
    denom = jnp.sum(e, axis=-1, keepdims=True)            # (block_b, 1)
    # exact division -> each row sums to 1 within f32 rounding
    out_ref[...] = e / denom


def _block_diag_theta(theta, A: int):
    """(d,) theta -> (A*d, A) block-diagonal matrix such that
    (ctx.reshape(B, A*d) @ theta_bd)[b, a] == ctx[b, a, :] @ theta."""
    theta = jnp.asarray(theta, jnp.float32).reshape(-1)
    eye = jnp.eye(A, dtype=jnp.float32)                               # (A, A)
    return (eye[:, None, :] * theta[None, :, None]).reshape(A * theta.shape[0], A)


@partial(jax.jit, static_argnames=("block_b", "vmem_budget_bytes"))
def utility_forward_batched(contexts, theta, block_b=None,
                            vmem_budget_bytes=16 * 1024 * 1024):
    """Batched forward: contexts (B, A, d), theta (d,) -> probs (B, A)."""
    contexts = jnp.asarray(contexts, jnp.float32)
    B, A, d = contexts.shape
    K = A * d

    # Padded VMEM footprint per batch row (last dims pad to 128 lanes).
    row_bytes = 4 * (_round_up(K, 128) + _round_up(A, 128))
    # Double-buffered in+out blocks must fit the (v5e-safe) VMEM budget.
    vmem_cap_rows = max(8, (vmem_budget_bytes // (2 * row_bytes)) // 8 * 8)

    bb = 1024 if block_b is None else int(block_b)
    bb = min(bb, vmem_cap_rows)
    if B > 16:
        # Keep >= 2 grid steps so the "parallel" axis can shard across both
        # TensorCores on v7x megacore.
        bb = min(bb, _round_up(-(-B // 2), 8))
    bb = _round_up(max(8, min(bb, _round_up(B, 8))), 8)

    B_pad = _round_up(max(B, bb), bb)
    grid = B_pad // bb

    ctx2d = contexts.reshape(B, K)            # free row-major reshape
    if B_pad != B:
        # Zero rows -> uniform softmax; sliced off below.
        ctx2d = jnp.pad(ctx2d, ((0, B_pad - B), (0, 0)))
    theta_bd = _block_diag_theta(theta, A)    # built once in the wrapper

    theta_bytes = 4 * _round_up(K, 8) * _round_up(A, 128)
    vmem_limit = min(max(2 * bb * row_bytes + 2 * theta_bytes + (2 << 20), 8 << 20),
                     64 << 20)

    out = pl.pallas_call(
        _utility_softmax_kernel,
        out_shape=jax.ShapeDtypeStruct((B_pad, A), jnp.float32),
        grid_spec=pltpu.PrefetchScalarGridSpec(
            num_scalar_prefetch=0,
            grid=(grid,),
            in_specs=[
                pl.BlockSpec((bb, K), lambda i: (i, 0)),
                pl.BlockSpec((K, A), lambda i: (0, 0)),   # constant -> resident
            ],
            out_specs=pl.BlockSpec((bb, A), lambda i: (i, 0)),
        ),
        compiler_params=pltpu.CompilerParams(
            dimension_semantics=("parallel",),
            vmem_limit_bytes=int(vmem_limit),
        ),
    )(ctx2d, theta_bd)
    return out[:B]


def utility_forward(context, theta):
    """Single context (A, d), theta (d,) -> prob (A,)  (matches torch .squeeze()).

    Routed through the batched Pallas kernel.  NOTE: a one-shot (A=8, d=32)
    problem is ~100 FLOPs; if this call sits inside a larger jitted program,
    prefer plain `jax.nn.softmax(context @ theta)` so XLA fuses it into its
    neighbours instead of paying a kernel dispatch.
    """
    context = jnp.asarray(context, jnp.float32)
    return utility_forward_batched(context[None], theta, block_b=8)[0]


if __name__ == "__main__":
    key = jax.random.PRNGKey(0)
    A, d = 8, 32   # A actions, action_context_dim = d

    k_ctx, k_theta, k_batch = jax.random.split(key, 3)
    context = jax.random.normal(k_ctx, (A, d), dtype=jnp.float32)
    # theta ~ torch.rand -> uniform [0, 1), deterministic here via PRNGKey(0)
    theta = jax.random.uniform(k_theta, (d,), dtype=jnp.float32)

    # --- single-context forward (matches the PyTorch module exactly) ---
    prob = utility_forward(context, theta)
    jax.block_until_ready(prob)
    ref_u = jnp.einsum("ad,d->a", context, theta,
                       precision=jax.lax.Precision.HIGHEST)
    ref = jax.nn.softmax(ref_u, axis=-1)
    assert prob.shape == (A,)
    assert jnp.allclose(prob, ref, atol=2e-3, rtol=2e-3)
    assert jnp.allclose(jnp.sum(prob), 1.0, atol=1e-5)   # exact normalization

    # --- batched forward: non-multiple batch size exercises the padding path ---
    B = 37
    contexts = jax.random.normal(k_batch, (B, A, d), dtype=jnp.float32)
    probs = utility_forward_batched(contexts, theta)
    jax.block_until_ready(probs)
    ref_ub = jnp.einsum("bad,d->ba", contexts, theta,
                        precision=jax.lax.Precision.HIGHEST)
    ref_b = jax.nn.softmax(ref_ub, axis=-1)
    assert probs.shape == (B, A)
    assert jnp.allclose(probs, ref_b, atol=2e-3, rtol=2e-3)
    assert jnp.allclose(jnp.sum(probs, axis=-1), 1.0, atol=1e-5)

    print("KERNEL_OK")
</pallas_src>

<mosaic_0001>
module attributes {stable_mosaic.version = 11 : i64} {
  func.func @_utility_softmax_kernel(%arg0: i32, %arg1: memref<8x256xf32, #tpu.memory_space<vmem>>, %arg2: memref<256x8xf32, #tpu.memory_space<vmem>>, %arg3: memref<8x8xf32, #tpu.memory_space<vmem>>) attributes {dimension_semantics = [#tpu.dimension_semantics<parallel>], iteration_bounds = array<i64: 1>, scalar_prefetch = 0 : i64, scratch_operands = 0 : i64, tpu.core_type = #tpu.core_type<tc>, window_params = [{transform_indices = @transform_0, window_bounds = array<i64: 8, 256>}, {pipeline_mode = #tpu.pipeline_mode<synchronous>, transform_indices = @transform_1, window_bounds = array<i64: 256, 8>}, {transform_indices = @transform_2, window_bounds = array<i64: 8, 8>}]} {
    %c0 = arith.constant 0 : index
    %c0_0 = arith.constant 0 : index
    %0 = vector.load %arg1[%c0, %c0_0] : memref<8x256xf32, #tpu.memory_space<vmem>>, vector<8x256xf32>
    %c0_1 = arith.constant 0 : index
    %c0_2 = arith.constant 0 : index
    %1 = vector.load %arg2[%c0_1, %c0_2] : memref<256x8xf32, #tpu.memory_space<vmem>>, vector<256x8xf32>
    %cst = arith.constant dense<0.000000e+00> : vector<8x8xf32>
    %2 = tpu.matmul %0, %1, %cst {dimension_numbers = #tpu.dot_dimension_numbers<[1], [0], [0], [1], [0, 0, 1, 1], [], []>} : vector<8x256xf32>, vector<256x8xf32>, vector<8x8xf32> -> vector<8x8xf32>
    %cst_3 = arith.constant dense<0xFF800000> : vector<8xf32>
    %3 = vector.multi_reduction <maximumf>, %2, %cst_3 [1] : vector<8x8xf32> to vector<8xf32>
    %4 = vector.shape_cast %3 : vector<8xf32> to vector<8x1xf32>
    %5 = vector.broadcast %4 : vector<8x1xf32> to vector<8x8xf32>
    %6 = arith.subf %2, %5 : vector<8x8xf32>
    %7 = math.exp %6 : vector<8x8xf32>
    %cst_4 = arith.constant dense<0.000000e+00> : vector<8xf32>
    %8 = vector.multi_reduction <add>, %7, %cst_4 [1] : vector<8x8xf32> to vector<8xf32>
    %9 = vector.shape_cast %8 : vector<8xf32> to vector<8x1xf32>
    %10 = vector.broadcast %9 : vector<8x1xf32> to vector<8x8xf32>
    %11 = arith.divf %7, %10 : vector<8x8xf32>
    %c0_5 = arith.constant 0 : index
    %c0_6 = arith.constant 0 : index
    %12 = vector.load %arg3[%c0_5, %c0_6] : memref<8x8xf32, #tpu.memory_space<vmem>>, vector<8x8xf32>
    tpu.vector_store %arg3[%c0_5, %c0_6], %11 {strides = array<i32>} : memref<8x8xf32, #tpu.memory_space<vmem>>, vector<8x8xf32>,
    return
  }
  func.func @transform_0(%arg0: i32) -> (i32, i32) {
    %c0_i32 = arith.constant 0 : i32
    %c0_i32_0 = arith.constant 0 : i32
    return %arg0, %c0_i32 : i32, i32
  }
  func.func @transform_1(%arg0: i32) -> (i32, i32) {
    %c0_i32 = arith.constant 0 : i32
    %c0_i32_0 = arith.constant 0 : i32
    %c0_i32_1 = arith.constant 0 : i32
    return %c0_i32, %c0_i32_0 : i32, i32
  }
  func.func @transform_2(%arg0: i32) -> (i32, i32) {
    %c0_i32 = arith.constant 0 : i32
    %c0_i32_0 = arith.constant 0 : i32
    return %arg0, %c0_i32 : i32, i32
  }
}

</mosaic_0001>

<bundles_post_ra>
// kernel: utility_forward_batched.1
= control target key start
LH: loop header
LB: loop body
LE: loop exit
PB: predicated region body
PF: predicated region fallthrough
CT: control target
= control target key end

     0   :  { %vm85_vm0 = vcmask 64512   ;;  %s242_s1 = inlined_call_operand.vmem [shape: f32[256,8], index: 1, kind: input, shape index: {}]   ;;  %s243_s0 = inlined_call_operand.vmem [shape: f32[8,256], index: 0, kind: input, shape index: {}]   ;;  %s244_s2 = inlined_call_operand.vmem [shape: f32[8,8], index: 2, kind: output, shape index: {}]  }
   0x1   :  { %v28_v0 = vld [vmem:[%s242_s1 + $0x78] sm:$0xff]  ;;  %v27_v2 = vld [vmem:[%s242_s1 + $0x70] sm:$0xff]  ;;  %v26_v4 = vld [vmem:[%s242_s1 + $0x68] sm:$0xff] }
   0x2   :  { %v44_v1 = vld [vmem:[%s242_s1 + $0xf8] sm:$0xff]  ;;  %45 = vmatpush.msra.mxu0 %v28_v0  ;;  %v43_v3 = vld [vmem:[%s242_s1 + $0xf0] sm:$0xff]  ;;  %v42_v5 = vld [vmem:[%s242_s1 + $0xe8] sm:$0xff] }
   0x3   :  { %65 = vmatpush.msra.mxu1 %v44_v1  ;;  %v25_v6 = vld [vmem:[%s242_s1 + $0x60] sm:$0xff]  ;;  %v24_v8 = vld [vmem:[%s242_s1 + $0x58] sm:$0xff]  ;;  %v23_v10 = vld [vmem:[%s242_s1 + $0x50] sm:$0xff] }
   0x4   :  { %46 = vmatpush.msra.mxu0 %v27_v2  ;;  %v41_v7 = vld [vmem:[%s242_s1 + $0xe0] sm:$0xff]  ;;  %v40_v9 = vld [vmem:[%s242_s1 + $0xd8] sm:$0xff]  ;;  %v39_v11 = vld [vmem:[%s242_s1 + $0xd0] sm:$0xff] }
   0x5   :  { %66 = vmatpush.msra.mxu1 %v43_v3  ;;  %v22_v12 = vld [vmem:[%s242_s1 + $0x48] sm:$0xff]  ;;  %v21_v14 = vld [vmem:[%s242_s1 + $0x40] sm:$0xff]  ;;  %v20_v16 = vld [vmem:[%s242_s1 + $0x38] sm:$0xff] }
   0x6   :  { %47 = vmatpush.msra.mxu0 %v26_v4  ;;  %v38_v13 = vld [vmem:[%s242_s1 + $0xc8] sm:$0xff]  ;;  %v37_v15 = vld [vmem:[%s242_s1 + $0xc0] sm:$0xff]  ;;  %v36_v17 = vld [vmem:[%s242_s1 + $0xb8] sm:$0xff] }
   0x7   :  { %67 = vmatpush.msra.mxu1 %v42_v5  ;;  %v19_v18 = vld [vmem:[%s242_s1 + $0x30] sm:$0xff]  ;;  %v18_v20 = vld [vmem:[%s242_s1 + $0x28] sm:$0xff]  ;;  %v17_v22 = vld [vmem:[%s242_s1 + $0x20] sm:$0xff] }
   0x8   :  { %48 = vmatpush.msra.mxu0 %v25_v6  ;;  %v35_v19 = vld [vmem:[%s242_s1 + $0xb0] sm:$0xff]  ;;  %v34_v21 = vld [vmem:[%s242_s1 + $0xa8] sm:$0xff]  ;;  %v33_v23 = vld [vmem:[%s242_s1 + $0xa0] sm:$0xff] }
   0x9   :  { %68 = vmatpush.msra.mxu1 %v41_v7  ;;  %v16_v24 = vld [vmem:[%s242_s1 + $0x18] sm:$0xff]  ;;  %v15_v26 = vld [vmem:[%s242_s1 + $0x10] sm:$0xff]  ;;  %v14_v28 = vld [vmem:[%s242_s1 + $0x8] sm:$0xff] }
   0xa   :  { %49 = vmatpush.msra.mxu0 %v24_v8  ;;  %v32_v25 = vld [vmem:[%s242_s1 + $0x98] sm:$0xff]  ;;  %v31_v27 = vld [vmem:[%s242_s1 + $0x90] sm:$0xff]  ;;  %v30_v29 = vld [vmem:[%s242_s1 + $0x88] sm:$0xff] }
   0xb   :  { %69 = vmatpush.msra.mxu1 %v40_v9  ;;  %v13_v30 = vld [vmem:[%s242_s1] sm:$0xff]  ;;  %v12_v33 = vld [vmem:[%s243_s0 + $0x8] sm:$0xff] }
   0xc   :  { %50 = vmatpush.msra.mxu0 %v23_v10  ;;  %v29_v31 = vld [vmem:[%s242_s1 + $0x80] sm:$0xff] }
   0xd   :  { %70 = vmatpush.msra.mxu1 %v39_v11  ;;  %v11_v32 = vld [vmem:[%s243_s0] sm:$0xff] }
   0xe   :  { %51 = vmatpush.msra.mxu0 %v22_v12 }
   0xf   :  { %71 = vmatpush.msra.mxu1 %v38_v13 }
  0x10   :  { %52 = vmatpush.msra.mxu0 %v21_v14 }
  0x11   :  { %72 = vmatpush.msra.mxu1 %v37_v15 }
  0x12   :  { %53 = vmatpush.msra.mxu0 %v20_v16 }
  0x13   :  { %73 = vmatpush.msra.mxu1 %v36_v17 }
  0x14   :  { %54 = vmatpush.msra.mxu0 %v19_v18 }
  0x15   :  { %74 = vmatpush.msra.mxu1 %v35_v19 }
  0x16   :  { %55 = vmatpush.msra.mxu0 %v18_v20 }
  0x17   :  { %75 = vmatpush.msra.mxu1 %v34_v21 }
  0x18   :  { %56 = vmatpush.msra.mxu0 %v17_v22 }
  0x19   :  { %76 = vmatpush.msra.mxu1 %v33_v23 }
  0x1a   :  { %57 = vmatpush.msra.mxu0 %v16_v24 }
  0x1b   :  { %77 = vmatpush.msra.mxu1 %v32_v25 }
  0x1c   :  { %58 = vmatpush.msra.mxu0 %v15_v26 }
  0x1d   :  { %78 = vmatpush.msra.mxu1 %v31_v27 }
  0x1e   :  { %59 = vmatpush.msra.mxu0 %v14_v28 }
  0x1f   :  { %79 = vmatpush.msra.mxu1 %v30_v29 }
  0x20   :  { %60 = vmatpush.msra.mxu0 %v13_v30 }
  0x21   :  { %80 = vmatpush.msra.mxu1 %v29_v31  ;;  %61 = vmatmul.f32.vlgmr.msra.gmra.mxu0 %v11_v32 }
  0x22   :  { %81 = vmatmul.f32.vlgmr.msra.gmra.mxu1 %v12_v33 }
  0x9e   :  { %v62_v34 = vpop.f32.mrf.mxu0 }
  0x9f   :  { %v82_v35 = vpop.f32.mrf.mxu1 }
  0xa0   :  { %v83_v36 = vadd.f32 %v82_v35, %v62_v34 }
  0xa2   :  { %v86_v37 = vsel %vm85_vm0, %v83_v36, -inf }
  0xa3   :  { %87 = vmax.xlane.f32.xlu0 %v86_v37 }
 0x116   :  { %v88_v38 = vpop.xlane.xlu0 %87 }
 0x117   :  { %v89_v39 = vsub.f32 %v83_v36, %v88_v38 }
 0x119   :  { %v90_v40 = vmul.f32 1.442695, %v89_v39 }
 0x11b   :  { %115 = vpow2.f32 %v90_v40 }
 0x121   :  { %v116_v41 = vpop.eup %115 }
 0x122   :  { %v92_v42 = vsel %vm85_vm0, %v116_v41, 0.0 }
 0x123   :  { %93 = vadd.xlane.f32.xlu0 %v92_v42 }
 0x196   :  { %v94_v43 = vpop.xlane.xlu0 %93 }
 0x197   :  { %117 = vrcp.f32 %v94_v43  ;;  %v106_v47 = vand.u32 2147483648, %v94_v43  ;;  %v104_v49 = vand.u32 2147483647, %v94_v43  ;;  %vm100_vm2 = vweird.f32 %v94_v43 }
 0x199   :  { %v107_v51 = vor.u32 1.1754944e-38, %v106_v47  ;;  %vm105_vm4 = vcmp.eq.f32.partialorder %v104_v49, 8.507059e+37 }
 0x19d   :  { %v118_v44 = vpop.eup %117 }
 0x19e   :  { %v96_v45 = vmul.f32 %v118_v44, %v94_v43  ;;  %vm101_vm1 = vweird.f32 %v118_v44 }
 0x19f   :  { %vm102_vm3 = vmor %vm100_vm2, %vm101_vm1 }
 0x1a0   :  { %v97_v46 = vsub.f32 1.0, %v96_v45 }
 0x1a2   :  { %v98_v48 = vmul.f32 %v118_v44, %v97_v46 }
 0x1a4   :  { %v99_v50 = vadd.f32 %v118_v44, %v98_v48 }
 0x1a6   :  { %v103_v52 = vsel %vm102_vm3, %v118_v44, %v99_v50 }
 0x1a7   :  { %v108_v53 = vsel %vm105_vm4, %v107_v51, %v103_v52 }
 0x1a8   :  { %v109_v54 = vmul.f32 %v116_v41, %v108_v53 }
 0x1aa   :  { %110 = vst.msk [vmem:[%s244_s2] sm:$0xff] %vm85_vm0, %v109_v54 }

</bundles_post_ra>
